<compile_context>
chip_gen: v5e
topology: v5e:2x2
jax: 0.10.0
libtpu: 0.0.40
codegen_flags: <defaults>
</compile_context>

<pallas_src>
import functools

import jax
import jax.numpy as jnp
from jax.experimental import pallas as pl
from jax.experimental.pallas import tpu as pltpu

_LANE = 128
_SUBLANE = 8

# Conservative residency budget: fits under the scoped-VMEM default on all
# generations (v7x has only 64 MiB physical / 32 MiB scoped by default).
_TABLE_VMEM_BUDGET_BYTES = 8 * 1024 * 1024


def _field_embedding_kernel(idx_ref, table_ref, out_ref, *, F, TB):
    # idx_ref:   (B_pad * F,) int32 in SMEM (scalar prefetch).
    # table_ref: (V, D_pad) embedding table, VMEM-resident (fetched once).
    # out_ref:   (TB, D_pad) output tile for this batch tile.
    bi = pl.program_id(0)

    rows = []
    for r in range(TB):  # static, fully unrolled at trace time (TB = 8)
        base = (bi * TB + r) * F
        # Start from the first gathered row (no zero-init + extra add).
        acc = table_ref[pl.ds(idx_ref[base], 1), :].astype(jnp.float32)
        for f in range(1, F):  # static, fully unrolled (small F)
            acc = acc + table_ref[pl.ds(idx_ref[base + f], 1), :].astype(jnp.float32)
        rows.append(acc)

    # One lane/sublane-dense (TB, D_pad) store -> unmasked vst, single DMA out.
    out_ref[...] = jnp.concatenate(rows, axis=0).astype(out_ref.dtype)


def field_embedding(x_idx, table, *, batch_tile=_SUBLANE):
    """Embedding lookup + sum over fields.

    x_idx: (B, F) integer indices into the embedding table.
    table: (V, D) float embedding table.
    returns (B, D) = sum_f table[x_idx[b, f]].
    """
    B, F = x_idx.shape
    V, D = table.shape
    TB = batch_tile

    # Lane-dense padding of the embedding dim, sublane-dense batch tiling.
    D_pad = pl.cdiv(D, _LANE) * _LANE
    B_pad = pl.cdiv(B, TB) * TB

    table_p = table if D_pad == D else jnp.pad(table, ((0, 0), (0, D_pad - D)))

    table_bytes = V * D_pad * table_p.dtype.itemsize
    if table_bytes > _TABLE_VMEM_BUDGET_BYTES:
        # TODO(synk): manual-gather path (memory_space=pl.ANY + async-copy ring)
        # for tables that exceed the VMEM residency budget.
        raise NotImplementedError("embedding table too large for VMEM-resident path")

    idx = x_idx.astype(jnp.int32)
    if B_pad != B:
        # Padded batch rows point at row 0; their outputs are sliced away below.
        idx = jnp.pad(idx, ((0, B_pad - B), (0, 0)))
    idx_flat = idx.reshape(B_pad * F)  # 1-D SMEM (avoids 2-D SMEM padding blowup)

    grid_spec = pltpu.PrefetchScalarGridSpec(
        num_scalar_prefetch=1,          # idx_flat lands in SMEM for the kernel body
        grid=(B_pad // TB,),            # field reduction folded into the body
        in_specs=[
            # Full table, constant block index -> fetched once, VMEM-resident.
            pl.BlockSpec((V, D_pad), lambda i, idx: (0, 0)),
        ],
        out_specs=pl.BlockSpec((TB, D_pad), lambda i, idx: (i, 0)),
    )

    out_padded = pl.pallas_call(
        functools.partial(_field_embedding_kernel, F=F, TB=TB),
        out_shape=jax.ShapeDtypeStruct((B_pad, D_pad), table.dtype),
        grid_spec=grid_spec,
        compiler_params=pltpu.CompilerParams(
            dimension_semantics=("parallel",),
        ),
    )(idx_flat, table_p)

    return out_padded[:B, :D]


if __name__ == "__main__":
    # Small shapes consistent with the module's forward:
    #   x: (batch=8, num_fields=4) integer ids into a (32, 32) embedding table.
    B, F = 8, 4
    num_embeddings, embedding_dim = 32, 32

    key = jax.random.PRNGKey(0)
    k_idx, k_tab = jax.random.split(key)

    # Deterministic parameter init (matches nn.Embedding's default N(0, 1) init).
    table = jax.random.normal(k_tab, (num_embeddings, embedding_dim), dtype=jnp.float32)
    x_idx = jax.random.randint(k_idx, (B, F), 0, num_embeddings, dtype=jnp.int32)

    out = field_embedding(x_idx, table)
    out = jax.block_until_ready(out)

    # Pure-JAX reference: embedding lookup then sum over the field axis.
    ref = jnp.take(table, x_idx, axis=0).sum(axis=1)

    assert out.shape == (B, embedding_dim), out.shape
    assert jnp.allclose(out, ref, atol=1e-5, rtol=1e-5), "mismatch vs reference"
    print("KERNEL_OK")
</pallas_src>

<mosaic_0001>
module attributes {stable_mosaic.version = 11 : i64} {
  func.func @_field_embedding_kernel(%arg0: i32, %arg1: memref<32xi32, #tpu.memory_space<smem>>, %arg2: memref<32x128xf32, #tpu.memory_space<vmem>>, %arg3: memref<8x128xf32, #tpu.memory_space<vmem>>) attributes {dimension_semantics = [#tpu.dimension_semantics<parallel>], iteration_bounds = array<i64: 1>, scalar_prefetch = 1 : i64, scratch_operands = 0 : i64, tpu.core_type = #tpu.core_type<tc>, window_params = [{pipeline_mode = #tpu.pipeline_mode<synchronous>, transform_indices = @transform_0, window_bounds = array<i64: 32, 128>}, {transform_indices = @transform_1, window_bounds = array<i64: 8, 128>}]} {
    %c8_i32 = arith.constant 8 : i32
    %0 = arith.muli %arg0, %c8_i32 : i32
    %c0_i32 = arith.constant 0 : i32
    %1 = arith.addi %0, %c0_i32 : i32
    %c4_i32 = arith.constant 4 : i32
    %2 = arith.muli %1, %c4_i32 : i32
    %3 = arith.index_cast %2 : i32 to index
    %4 = memref.load %arg1[%3] : memref<32xi32, #tpu.memory_space<smem>>
    %5 = arith.index_cast %4 : i32 to index
    %c0 = arith.constant 0 : index
    %6 = vector.load %arg2[%5, %c0] : memref<32x128xf32, #tpu.memory_space<vmem>>, vector<1x128xf32>
    %c1_i32 = arith.constant 1 : i32
    %7 = arith.addi %2, %c1_i32 : i32
    %8 = arith.index_cast %7 : i32 to index
    %9 = memref.load %arg1[%8] : memref<32xi32, #tpu.memory_space<smem>>
    %10 = arith.index_cast %9 : i32 to index
    %c0_0 = arith.constant 0 : index
    %11 = vector.load %arg2[%10, %c0_0] : memref<32x128xf32, #tpu.memory_space<vmem>>, vector<1x128xf32>
    %12 = arith.addf %6, %11 : vector<1x128xf32>
    %c2_i32 = arith.constant 2 : i32
    %13 = arith.addi %2, %c2_i32 : i32
    %14 = arith.index_cast %13 : i32 to index
    %15 = memref.load %arg1[%14] : memref<32xi32, #tpu.memory_space<smem>>
    %16 = arith.index_cast %15 : i32 to index
    %c0_1 = arith.constant 0 : index
    %17 = vector.load %arg2[%16, %c0_1] : memref<32x128xf32, #tpu.memory_space<vmem>>, vector<1x128xf32>
    %18 = arith.addf %12, %17 : vector<1x128xf32>
    %c3_i32 = arith.constant 3 : i32
    %19 = arith.addi %2, %c3_i32 : i32
    %20 = arith.index_cast %19 : i32 to index
    %21 = memref.load %arg1[%20] : memref<32xi32, #tpu.memory_space<smem>>
    %22 = arith.index_cast %21 : i32 to index
    %c0_2 = arith.constant 0 : index
    %23 = vector.load %arg2[%22, %c0_2] : memref<32x128xf32, #tpu.memory_space<vmem>>, vector<1x128xf32>
    %24 = arith.addf %18, %23 : vector<1x128xf32>
    %c8_i32_3 = arith.constant 8 : i32
    %25 = arith.muli %arg0, %c8_i32_3 : i32
    %c1_i32_4 = arith.constant 1 : i32
    %26 = arith.addi %25, %c1_i32_4 : i32
    %c4_i32_5 = arith.constant 4 : i32
    %27 = arith.muli %26, %c4_i32_5 : i32
    %28 = arith.index_cast %27 : i32 to index
    %29 = memref.load %arg1[%28] : memref<32xi32, #tpu.memory_space<smem>>
    %30 = arith.index_cast %29 : i32 to index
    %c0_6 = arith.constant 0 : index
    %31 = vector.load %arg2[%30, %c0_6] : memref<32x128xf32, #tpu.memory_space<vmem>>, vector<1x128xf32>
    %c1_i32_7 = arith.constant 1 : i32
    %32 = arith.addi %27, %c1_i32_7 : i32
    %33 = arith.index_cast %32 : i32 to index
    %34 = memref.load %arg1[%33] : memref<32xi32, #tpu.memory_space<smem>>
    %35 = arith.index_cast %34 : i32 to index
    %c0_8 = arith.constant 0 : index
    %36 = vector.load %arg2[%35, %c0_8] : memref<32x128xf32, #tpu.memory_space<vmem>>, vector<1x128xf32>
    %37 = arith.addf %31, %36 : vector<1x128xf32>
    %c2_i32_9 = arith.constant 2 : i32
    %38 = arith.addi %27, %c2_i32_9 : i32
    %39 = arith.index_cast %38 : i32 to index
    %40 = memref.load %arg1[%39] : memref<32xi32, #tpu.memory_space<smem>>
    %41 = arith.index_cast %40 : i32 to index
    %c0_10 = arith.constant 0 : index
    %42 = vector.load %arg2[%41, %c0_10] : memref<32x128xf32, #tpu.memory_space<vmem>>, vector<1x128xf32>
    %43 = arith.addf %37, %42 : vector<1x128xf32>
    %c3_i32_11 = arith.constant 3 : i32
    %44 = arith.addi %27, %c3_i32_11 : i32
    %45 = arith.index_cast %44 : i32 to index
    %46 = memref.load %arg1[%45] : memref<32xi32, #tpu.memory_space<smem>>
    %47 = arith.index_cast %46 : i32 to index
    %c0_12 = arith.constant 0 : index
    %48 = vector.load %arg2[%47, %c0_12] : memref<32x128xf32, #tpu.memory_space<vmem>>, vector<1x128xf32>
    %49 = arith.addf %43, %48 : vector<1x128xf32>
    %c8_i32_13 = arith.constant 8 : i32
    %50 = arith.muli %arg0, %c8_i32_13 : i32
    %c2_i32_14 = arith.constant 2 : i32
    %51 = arith.addi %50, %c2_i32_14 : i32
    %c4_i32_15 = arith.constant 4 : i32
    %52 = arith.muli %51, %c4_i32_15 : i32
    %53 = arith.index_cast %52 : i32 to index
    %54 = memref.load %arg1[%53] : memref<32xi32, #tpu.memory_space<smem>>
    %55 = arith.index_cast %54 : i32 to index
    %c0_16 = arith.constant 0 : index
    %56 = vector.load %arg2[%55, %c0_16] : memref<32x128xf32, #tpu.memory_space<vmem>>, vector<1x128xf32>
    %c1_i32_17 = arith.constant 1 : i32
    %57 = arith.addi %52, %c1_i32_17 : i32
    %58 = arith.index_cast %57 : i32 to index
    %59 = memref.load %arg1[%58] : memref<32xi32, #tpu.memory_space<smem>>
    %60 = arith.index_cast %59 : i32 to index
    %c0_18 = arith.constant 0 : index
    %61 = vector.load %arg2[%60, %c0_18] : memref<32x128xf32, #tpu.memory_space<vmem>>, vector<1x128xf32>
    %62 = arith.addf %56, %61 : vector<1x128xf32>
    %c2_i32_19 = arith.constant 2 : i32
    %63 = arith.addi %52, %c2_i32_19 : i32
    %64 = arith.index_cast %63 : i32 to index
    %65 = memref.load %arg1[%64] : memref<32xi32, #tpu.memory_space<smem>>
    %66 = arith.index_cast %65 : i32 to index
    %c0_20 = arith.constant 0 : index
    %67 = vector.load %arg2[%66, %c0_20] : memref<32x128xf32, #tpu.memory_space<vmem>>, vector<1x128xf32>
    %68 = arith.addf %62, %67 : vector<1x128xf32>
    %c3_i32_21 = arith.constant 3 : i32
    %69 = arith.addi %52, %c3_i32_21 : i32
    %70 = arith.index_cast %69 : i32 to index
    %71 = memref.load %arg1[%70] : memref<32xi32, #tpu.memory_space<smem>>
    %72 = arith.index_cast %71 : i32 to index
    %c0_22 = arith.constant 0 : index
    %73 = vector.load %arg2[%72, %c0_22] : memref<32x128xf32, #tpu.memory_space<vmem>>, vector<1x128xf32>
    %74 = arith.addf %68, %73 : vector<1x128xf32>
    %c8_i32_23 = arith.constant 8 : i32
    %75 = arith.muli %arg0, %c8_i32_23 : i32
    %c3_i32_24 = arith.constant 3 : i32
    %76 = arith.addi %75, %c3_i32_24 : i32
    %c4_i32_25 = arith.constant 4 : i32
    %77 = arith.muli %76, %c4_i32_25 : i32
    %78 = arith.index_cast %77 : i32 to index
    %79 = memref.load %arg1[%78] : memref<32xi32, #tpu.memory_space<smem>>
    %80 = arith.index_cast %79 : i32 to index
    %c0_26 = arith.constant 0 : index
    %81 = vector.load %arg2[%80, %c0_26] : memref<32x128xf32, #tpu.memory_space<vmem>>, vector<1x128xf32>
    %c1_i32_27 = arith.constant 1 : i32
    %82 = arith.addi %77, %c1_i32_27 : i32
    %83 = arith.index_cast %82 : i32 to index
    %84 = memref.load %arg1[%83] : memref<32xi32, #tpu.memory_space<smem>>
    %85 = arith.index_cast %84 : i32 to index
    %c0_28 = arith.constant 0 : index
    %86 = vector.load %arg2[%85, %c0_28] : memref<32x128xf32, #tpu.memory_space<vmem>>, vector<1x128xf32>
    %87 = arith.addf %81, %86 : vector<1x128xf32>
    %c2_i32_29 = arith.constant 2 : i32
    %88 = arith.addi %77, %c2_i32_29 : i32
    %89 = arith.index_cast %88 : i32 to index
    %90 = memref.load %arg1[%89] : memref<32xi32, #tpu.memory_space<smem>>
    %91 = arith.index_cast %90 : i32 to index
    %c0_30 = arith.constant 0 : index
    %92 = vector.load %arg2[%91, %c0_30] : memref<32x128xf32, #tpu.memory_space<vmem>>, vector<1x128xf32>
    %93 = arith.addf %87, %92 : vector<1x128xf32>
    %c3_i32_31 = arith.constant 3 : i32
    %94 = arith.addi %77, %c3_i32_31 : i32
    %95 = arith.index_cast %94 : i32 to index
    %96 = memref.load %arg1[%95] : memref<32xi32, #tpu.memory_space<smem>>
    %97 = arith.index_cast %96 : i32 to index
    %c0_32 = arith.constant 0 : index
    %98 = vector.load %arg2[%97, %c0_32] : memref<32x128xf32, #tpu.memory_space<vmem>>, vector<1x128xf32>
    %99 = arith.addf %93, %98 : vector<1x128xf32>
    %c8_i32_33 = arith.constant 8 : i32
    %100 = arith.muli %arg0, %c8_i32_33 : i32
    %c4_i32_34 = arith.constant 4 : i32
    %101 = arith.addi %100, %c4_i32_34 : i32
    %c4_i32_35 = arith.constant 4 : i32
    %102 = arith.muli %101, %c4_i32_35 : i32
    %103 = arith.index_cast %102 : i32 to index
    %104 = memref.load %arg1[%103] : memref<32xi32, #tpu.memory_space<smem>>
    %105 = arith.index_cast %104 : i32 to index
    %c0_36 = arith.constant 0 : index
    %106 = vector.load %arg2[%105, %c0_36] : memref<32x128xf32, #tpu.memory_space<vmem>>, vector<1x128xf32>
    %c1_i32_37 = arith.constant 1 : i32
    %107 = arith.addi %102, %c1_i32_37 : i32
    %108 = arith.index_cast %107 : i32 to index
    %109 = memref.load %arg1[%108] : memref<32xi32, #tpu.memory_space<smem>>
    %110 = arith.index_cast %109 : i32 to index
    %c0_38 = arith.constant 0 : index
    %111 = vector.load %arg2[%110, %c0_38] : memref<32x128xf32, #tpu.memory_space<vmem>>, vector<1x128xf32>
    %112 = arith.addf %106, %111 : vector<1x128xf32>
    %c2_i32_39 = arith.constant 2 : i32
    %113 = arith.addi %102, %c2_i32_39 : i32
    %114 = arith.index_cast %113 : i32 to index
    %115 = memref.load %arg1[%114] : memref<32xi32, #tpu.memory_space<smem>>
    %116 = arith.index_cast %115 : i32 to index
    %c0_40 = arith.constant 0 : index
    %117 = vector.load %arg2[%116, %c0_40] : memref<32x128xf32, #tpu.memory_space<vmem>>, vector<1x128xf32>
    %118 = arith.addf %112, %117 : vector<1x128xf32>
    %c3_i32_41 = arith.constant 3 : i32
    %119 = arith.addi %102, %c3_i32_41 : i32
    %120 = arith.index_cast %119 : i32 to index
    %121 = memref.load %arg1[%120] : memref<32xi32, #tpu.memory_space<smem>>
    %122 = arith.index_cast %121 : i32 to index
    %c0_42 = arith.constant 0 : index
    %123 = vector.load %arg2[%122, %c0_42] : memref<32x128xf32, #tpu.memory_space<vmem>>, vector<1x128xf32>
    %124 = arith.addf %118, %123 : vector<1x128xf32>
    %c8_i32_43 = arith.constant 8 : i32
    %125 = arith.muli %arg0, %c8_i32_43 : i32
    %c5_i32 = arith.constant 5 : i32
    %126 = arith.addi %125, %c5_i32 : i32
    %c4_i32_44 = arith.constant 4 : i32
    %127 = arith.muli %126, %c4_i32_44 : i32
    %128 = arith.index_cast %127 : i32 to index
    %129 = memref.load %arg1[%128] : memref<32xi32, #tpu.memory_space<smem>>
    %130 = arith.index_cast %129 : i32 to index
    %c0_45 = arith.constant 0 : index
    %131 = vector.load %arg2[%130, %c0_45] : memref<32x128xf32, #tpu.memory_space<vmem>>, vector<1x128xf32>
    %c1_i32_46 = arith.constant 1 : i32
    %132 = arith.addi %127, %c1_i32_46 : i32
    %133 = arith.index_cast %132 : i32 to index
    %134 = memref.load %arg1[%133] : memref<32xi32, #tpu.memory_space<smem>>
    %135 = arith.index_cast %134 : i32 to index
    %c0_47 = arith.constant 0 : index
    %136 = vector.load %arg2[%135, %c0_47] : memref<32x128xf32, #tpu.memory_space<vmem>>, vector<1x128xf32>
    %137 = arith.addf %131, %136 : vector<1x128xf32>
    %c2_i32_48 = arith.constant 2 : i32
    %138 = arith.addi %127, %c2_i32_48 : i32
    %139 = arith.index_cast %138 : i32 to index
    %140 = memref.load %arg1[%139] : memref<32xi32, #tpu.memory_space<smem>>
    %141 = arith.index_cast %140 : i32 to index
    %c0_49 = arith.constant 0 : index
    %142 = vector.load %arg2[%141, %c0_49] : memref<32x128xf32, #tpu.memory_space<vmem>>, vector<1x128xf32>
    %143 = arith.addf %137, %142 : vector<1x128xf32>
    %c3_i32_50 = arith.constant 3 : i32
    %144 = arith.addi %127, %c3_i32_50 : i32
    %145 = arith.index_cast %144 : i32 to index
    %146 = memref.load %arg1[%145] : memref<32xi32, #tpu.memory_space<smem>>
    %147 = arith.index_cast %146 : i32 to index
    %c0_51 = arith.constant 0 : index
    %148 = vector.load %arg2[%147, %c0_51] : memref<32x128xf32, #tpu.memory_space<vmem>>, vector<1x128xf32>
    %149 = arith.addf %143, %148 : vector<1x128xf32>
    %c8_i32_52 = arith.constant 8 : i32
    %150 = arith.muli %arg0, %c8_i32_52 : i32
    %c6_i32 = arith.constant 6 : i32
    %151 = arith.addi %150, %c6_i32 : i32
    %c4_i32_53 = arith.constant 4 : i32
    %152 = arith.muli %151, %c4_i32_53 : i32
    %153 = arith.index_cast %152 : i32 to index
    %154 = memref.load %arg1[%153] : memref<32xi32, #tpu.memory_space<smem>>
    %155 = arith.index_cast %154 : i32 to index
    %c0_54 = arith.constant 0 : index
    %156 = vector.load %arg2[%155, %c0_54] : memref<32x128xf32, #tpu.memory_space<vmem>>, vector<1x128xf32>
    %c1_i32_55 = arith.constant 1 : i32
    %157 = arith.addi %152, %c1_i32_55 : i32
    %158 = arith.index_cast %157 : i32 to index
    %159 = memref.load %arg1[%158] : memref<32xi32, #tpu.memory_space<smem>>
    %160 = arith.index_cast %159 : i32 to index
    %c0_56 = arith.constant 0 : index
    %161 = vector.load %arg2[%160, %c0_56] : memref<32x128xf32, #tpu.memory_space<vmem>>, vector<1x128xf32>
    %162 = arith.addf %156, %161 : vector<1x128xf32>
    %c2_i32_57 = arith.constant 2 : i32
    %163 = arith.addi %152, %c2_i32_57 : i32
    %164 = arith.index_cast %163 : i32 to index
    %165 = memref.load %arg1[%164] : memref<32xi32, #tpu.memory_space<smem>>
    %166 = arith.index_cast %165 : i32 to index
    %c0_58 = arith.constant 0 : index
    %167 = vector.load %arg2[%166, %c0_58] : memref<32x128xf32, #tpu.memory_space<vmem>>, vector<1x128xf32>
    %168 = arith.addf %162, %167 : vector<1x128xf32>
    %c3_i32_59 = arith.constant 3 : i32
    %169 = arith.addi %152, %c3_i32_59 : i32
    %170 = arith.index_cast %169 : i32 to index
    %171 = memref.load %arg1[%170] : memref<32xi32, #tpu.memory_space<smem>>
    %172 = arith.index_cast %171 : i32 to index
    %c0_60 = arith.constant 0 : index
    %173 = vector.load %arg2[%172, %c0_60] : memref<32x128xf32, #tpu.memory_space<vmem>>, vector<1x128xf32>
    %174 = arith.addf %168, %173 : vector<1x128xf32>
    %c8_i32_61 = arith.constant 8 : i32
    %175 = arith.muli %arg0, %c8_i32_61 : i32
    %c7_i32 = arith.constant 7 : i32
    %176 = arith.addi %175, %c7_i32 : i32
    %c4_i32_62 = arith.constant 4 : i32
    %177 = arith.muli %176, %c4_i32_62 : i32
    %178 = arith.index_cast %177 : i32 to index
    %179 = memref.load %arg1[%178] : memref<32xi32, #tpu.memory_space<smem>>
    %180 = arith.index_cast %179 : i32 to index
    %c0_63 = arith.constant 0 : index
    %181 = vector.load %arg2[%180, %c0_63] : memref<32x128xf32, #tpu.memory_space<vmem>>, vector<1x128xf32>
    %c1_i32_64 = arith.constant 1 : i32
    %182 = arith.addi %177, %c1_i32_64 : i32
    %183 = arith.index_cast %182 : i32 to index
    %184 = memref.load %arg1[%183] : memref<32xi32, #tpu.memory_space<smem>>
    %185 = arith.index_cast %184 : i32 to index
    %c0_65 = arith.constant 0 : index
    %186 = vector.load %arg2[%185, %c0_65] : memref<32x128xf32, #tpu.memory_space<vmem>>, vector<1x128xf32>
    %187 = arith.addf %181, %186 : vector<1x128xf32>
    %c2_i32_66 = arith.constant 2 : i32
    %188 = arith.addi %177, %c2_i32_66 : i32
    %189 = arith.index_cast %188 : i32 to index
    %190 = memref.load %arg1[%189] : memref<32xi32, #tpu.memory_space<smem>>
    %191 = arith.index_cast %190 : i32 to index
    %c0_67 = arith.constant 0 : index
    %192 = vector.load %arg2[%191, %c0_67] : memref<32x128xf32, #tpu.memory_space<vmem>>, vector<1x128xf32>
    %193 = arith.addf %187, %192 : vector<1x128xf32>
    %c3_i32_68 = arith.constant 3 : i32
    %194 = arith.addi %177, %c3_i32_68 : i32
    %195 = arith.index_cast %194 : i32 to index
    %196 = memref.load %arg1[%195] : memref<32xi32, #tpu.memory_space<smem>>
    %197 = arith.index_cast %196 : i32 to index
    %c0_69 = arith.constant 0 : index
    %198 = vector.load %arg2[%197, %c0_69] : memref<32x128xf32, #tpu.memory_space<vmem>>, vector<1x128xf32>
    %199 = arith.addf %193, %198 : vector<1x128xf32>
    %200 = tpu.concatenate %24, %49, %74, %99, %124, %149, %174, %199 in 0 : vector<1x128xf32>, vector<1x128xf32>, vector<1x128xf32>, vector<1x128xf32>, vector<1x128xf32>, vector<1x128xf32>, vector<1x128xf32>, vector<1x128xf32> -> vector<8x128xf32>
    %c0_70 = arith.constant 0 : index
    %c0_71 = arith.constant 0 : index
    %201 = vector.load %arg3[%c0_70, %c0_71] : memref<8x128xf32, #tpu.memory_space<vmem>>, vector<8x128xf32>
    tpu.vector_store %arg3[%c0_70, %c0_71], %200 {strides = array<i32>} : memref<8x128xf32, #tpu.memory_space<vmem>>, vector<8x128xf32>,
    return
  }
  func.func @transform_0(%arg0: i32, %arg1: memref<32xi32, #tpu.memory_space<smem>>) -> (i32, i32) {
    %c0_i32 = arith.constant 0 : i32
    %c0_i32_0 = arith.constant 0 : i32
    %c0_i32_1 = arith.constant 0 : i32
    return %c0_i32, %c0_i32_0 : i32, i32
  }
  func.func @transform_1(%arg0: i32, %arg1: memref<32xi32, #tpu.memory_space<smem>>) -> (i32, i32) {
    %c0_i32 = arith.constant 0 : i32
    %c0_i32_0 = arith.constant 0 : i32
    return %arg0, %c0_i32 : i32, i32
  }
}

</mosaic_0001>

<bundles_post_ra>
// kernel: tpu_custom_call.1
= control target key start
LH: loop header
LB: loop body
LE: loop exit
PB: predicated region body
PF: predicated region fallthrough
CT: control target
= control target key end

     0   :  { %s381_s12 = smov [#allocation3]   ;;  %s461_s0 = inlined_call_operand.hbm [shape: s32[32], index: 0, kind: input, shape index: {}]   ;;  %s462_s1 = inlined_call_operand.hbm [shape: f32[32,128], index: 1, kind: input, shape index: {}]   ;;  %s463_s2 = inlined_call_operand.hbm [shape: f32[8,128], index: 2, kind: output, shape index: {}]  }
   0x1   :  { %s8_s11 = sshll.u32 %s461_s0, 4  ;;  %s9_s11 = int_to_ptr.hbm [resolvable:$true] %s8_s11 }
   0x2   :  { %11 = dma.hbm_to_smem %s9_s11, 16, %s381_s12, [#allocation2] }
   0x3   :  { %375 = dma.done.wait [#allocation2], 16 }
   0x4   :  { %376 = vsyncadd [#allocation2], 4294967280 }
   0x5   :  { %14 = sfence }
   0x6   :  { %15 = vsyncpa [#allocation5], 0 }
   0x7   :  { %16 = vsyncpa [#allocation6], 0  ;;  %s21_s15 = sshll.u32 %s462_s1, 4  ;;  %s382_s16 = smov [#allocation4]   ;;  %s22_s15 = int_to_ptr.hbm [resolvable:$true] %s21_s15 }
   0x8   :  { %s23_s17 = sshll.u32 %s382_s16, 4  ;;  %s383_s18 = smov 128   ;;  %s24_s17 = int_to_ptr.vmem [resolvable:$true] %s23_s17 }
   0x9   :  { %s384_s19 = smov 8  }
   0xa   :  { %29 = dma.hbm_to_vmem [thread:$0]  %s22_s15, 512, %s24_s17, [#allocation5], %s383_s18, %s383_s18, %s384_s19  }
   0xb   :  { %377 = dma.done.wait [#allocation5], 512  }
   0xc   :  { %378 = vsyncadd [#allocation5], 4294966784  ;;  %s35_s0 = sld [smem:[#allocation3]]  ;;  %vm215_vm0 = vcmask 1040384   ;;  %vm217_vm1 = vcmask 1041408   ;;  %vm219_vm2 = vcmask 1042432  }
   0xd   :  { %s279_s20 = sld [smem:[#allocation3 + $0x1]]  ;;  %vm221_vm3 = vcmask 1043456   ;;  %vm223_vm4 = vcmask 1044480   ;;  %vm225_vm5 = vcmask 1045504   ;;  %vm227_vm6 = vcmask 1046528  }
   0xe   :  { %s280_s21 = sld [smem:[#allocation3 + $0x2]] }
   0xf   :  { %s407_s22 = sld [smem:[#allocation3 + $0x3]] }
  0x10   :  { %s282_s23 = sld [smem:[#allocation3 + $0x4]] }
  0x11   :  { %s283_s24 = sld [smem:[#allocation3 + $0x5]] }
  0x12   :  { %s284_s25 = sld [smem:[#allocation3 + $0x6]]  ;;  %s36_s28 = scalar_lea.vmem [#allocation4], %s35_s0 }
  0x13   :  { %s285_s26 = sld [smem:[#allocation3 + $0x7]]  ;;  %v37_v0 = vld [vmem:[%s36_s28] sm:$0x1]  ;;  %s40_s29 = scalar_lea.vmem [#allocation4], %s279_s20 }
  0x14   :  { %s286_s27 = sld [smem:[#allocation3 + $0x8]]  ;;  %v41_v1 = vld [vmem:[%s40_s29] sm:$0x1]  ;;  %s45_s9 = scalar_lea.vmem [#allocation4], %s280_s21 }
  0x15   :  { %s287_s1 = sld [smem:[#allocation3 + $0x9]]  ;;  %v46_v6 = vld [vmem:[%s45_s9] sm:$0x1]  ;;  %v42_v8 = vadd.f32 %v41_v1, %v37_v0  ;;  %s50_s18 = scalar_lea.vmem [#allocation4], %s407_s22 }
  0x16   :  { %s288_s30 = sld [smem:[#allocation3 + $0xa]]  ;;  %s57_s3 = scalar_lea.vmem [#allocation4], %s282_s23  ;;  %v51_v14 = vld [vmem:[%s50_s18] sm:$0x1] }
  0x17   :  { %v58_v2 = vld [vmem:[%s57_s3] sm:$0x1]  ;;  %s289_s4 = sld [smem:[#allocation3 + $0xb]]  ;;  %s61_s5 = scalar_lea.vmem [#allocation4], %s283_s24  ;;  %v47_v16 = vadd.f32 %v46_v6, %v42_v8 }
  0x18   :  { %v62_v3 = vld [vmem:[%s61_s5] sm:$0x1]  ;;  %s409_s6 = sld [smem:[#allocation3 + $0xc]]  ;;  %s66_s7 = scalar_lea.vmem [#allocation4], %s284_s25 }
  0x19   :  { %v63_v4 = vadd.f32 %v62_v3, %v58_v2  ;;  %v67_v5 = vld [vmem:[%s66_s7] sm:$0x1]  ;;  %s411_s8 = sld [smem:[#allocation3 + $0xd]]  ;;  %s71_s10 = scalar_lea.vmem [#allocation4], %s285_s26  ;;  %v52_v25 = vadd.f32 %v51_v14, %v47_v16 }
  0x1a   :  { %v72_v7 = vld [vmem:[%s71_s10] sm:$0x1]  ;;  %s413_s11 = sld [smem:[#allocation3 + $0xe]]  ;;  %s77_s12 = scalar_lea.vmem [#allocation4], %s286_s27 }
  0x1b   :  { %v68_v9 = vadd.f32 %v67_v5, %v63_v4  ;;  %v78_v10 = vld [vmem:[%s77_s12] sm:$0x1]  ;;  %s293_s13 = sld [smem:[#allocation3 + $0xf]]  ;;  %s81_s14 = scalar_lea.vmem [#allocation4], %s287_s1 }
  0x1c   :  { %v82_v11 = vld [vmem:[%s81_s14] sm:$0x1]  ;;  %s415_s15 = sld [smem:[#allocation3 + $0x10]]  ;;  %s86_s16 = scalar_lea.vmem [#allocation4], %s288_s30 }
  0x1d   :  { %v83_v12 = vadd.f32 %v82_v11, %v78_v10  ;;  %v87_v13 = vld [vmem:[%s86_s16] sm:$0x1]  ;;  %s417_s17 = sld [smem:[#allocation3 + $0x11]]  ;;  %s91_s19 = scalar_lea.vmem [#allocation4], %s289_s4  ;;  %v73_v17 = vadd.f32 %v72_v7, %v68_v9 }
  0x1e   :  { %v92_v15 = vld [vmem:[%s91_s19] sm:$0x1]  ;;  %s420_s0 = sld [smem:[#allocation3 + $0x12]]  ;;  %s97_s20 = scalar_lea.vmem [#allocation4], %s409_s6 }
  0x1f   :  { %v88_v18 = vadd.f32 %v87_v13, %v83_v12  ;;  %v98_v19 = vld [vmem:[%s97_s20] sm:$0x1]  ;;  %s297_s21 = sld [smem:[#allocation3 + $0x13]]  ;;  %s101_s23 = scalar_lea.vmem [#allocation4], %s411_s8  ;;  %v195_v28 = vrot.slane %v73_v17, 7 }
  0x20   :  { %v102_v20 = vld [vmem:[%s101_s23] sm:$0x1]  ;;  %s424_s24 = sld [smem:[#allocation3 + $0x14]]  ;;  %s106_s25 = scalar_lea.vmem [#allocation4], %s413_s11 }
  0x21   :  { %v103_v21 = vadd.f32 %v102_v20, %v98_v19  ;;  %v107_v22 = vld [vmem:[%s106_s25] sm:$0x1]  ;;  %s427_s22 = sld [smem:[#allocation3 + $0x15]]  ;;  %v93_v23 = vadd.f32 %v92_v15, %v88_v18  ;;  %s111_s26 = scalar_lea.vmem [#allocation4], %s293_s13  ;;  %v216_v37 = vsel %vm215_vm0, %v52_v25, %v195_v28 }
  0x22   :  { %v112_v24 = vld [vmem:[%s111_s26] sm:$0x1]  ;;  %s429_s27 = sld [smem:[#allocation3 + $0x16]]  ;;  %s117_s1 = scalar_lea.vmem [#allocation4], %s415_s15 }
  0x23   :  { %v108_v26 = vadd.f32 %v107_v22, %v103_v21  ;;  %v118_v27 = vld [vmem:[%s117_s1] sm:$0x1]  ;;  %s432_s28 = sld [smem:[#allocation3 + $0x17]]  ;;  %s121_s29 = scalar_lea.vmem [#allocation4], %s417_s17  ;;  %v198_v34 = vrot.slane %v93_v23, 6 }
  0x24   :  { %v122_v29 = vld [vmem:[%s121_s29] sm:$0x1]  ;;  %s435_s30 = sld [smem:[#allocation3 + $0x18]]  ;;  %s126_s3 = scalar_lea.vmem [#allocation4], %s420_s0 }
  0x25   :  { %v113_v30 = vadd.f32 %v112_v24, %v108_v26  ;;  %v123_v31 = vadd.f32 %v122_v29, %v118_v27  ;;  %v127_v32 = vld [vmem:[%s126_s3] sm:$0x1]  ;;  %s438_s4 = sld [smem:[#allocation3 + $0x19]]  ;;  %s131_s5 = scalar_lea.vmem [#allocation4], %s297_s21  ;;  %v218_v44 = vsel %vm217_vm1, %v216_v37, %v198_v34 }
  0x26   :  { %v132_v33 = vld [vmem:[%s131_s5] sm:$0x1]  ;;  %s440_s6 = sld [smem:[#allocation3 + $0x1a]]  ;;  %s137_s7 = scalar_lea.vmem [#allocation4], %s424_s24 }
  0x27   :  { %v128_v35 = vadd.f32 %v127_v32, %v123_v31  ;;  %v138_v36 = vld [vmem:[%s137_s7] sm:$0x1]  ;;  %s443_s8 = sld [smem:[#allocation3 + $0x1b]]  ;;  %s141_s9 = scalar_lea.vmem [#allocation4], %s427_s22  ;;  %v201_v42 = vrot.slane %v113_v30, 5 }
  0x28   :  { %v142_v38 = vld [vmem:[%s141_s9] sm:$0x1]  ;;  %s446_s10 = sld [smem:[#allocation3 + $0x1c]]  ;;  %s146_s11 = scalar_lea.vmem [#allocation4], %s429_s27 }
  0x29   :  { %v133_v39 = vadd.f32 %v132_v33, %v128_v35  ;;  %v143_v40 = vadd.f32 %v142_v38, %v138_v36  ;;  %v147_v41 = vld [vmem:[%s146_s11] sm:$0x1]  ;;  %s307_s12 = sld [smem:[#allocation3 + $0x1d]]  ;;  %s151_s13 = scalar_lea.vmem [#allocation4], %s432_s28  ;;  %v220_v52 = vsel %vm219_vm2, %v218_v44, %v201_v42 }
  0x2a   :  { %v152_v43 = vld [vmem:[%s151_s13] sm:$0x1]  ;;  %s450_s14 = sld [smem:[#allocation3 + $0x1e]]  ;;  %s157_s15 = scalar_lea.vmem [#allocation4], %s435_s30 }
  0x2b   :  { %v148_v45 = vadd.f32 %v147_v41, %v143_v40  ;;  %v158_v46 = vld [vmem:[%s157_s15] sm:$0x1]  ;;  %s309_s16 = sld [smem:[#allocation3 + $0x1f]]  ;;  %s161_s17 = scalar_lea.vmem [#allocation4], %s438_s4  ;;  %v204_v48 = vrot.slane %v133_v39, 4 }
  0x2c   :  { %v162_v47 = vld [vmem:[%s161_s17] sm:$0x1]  ;;  %s166_s18 = scalar_lea.vmem [#allocation4], %s440_s6  ;;  %s385_s24 = smov [#allocation7]  }
  0x2d   :  { %v153_v49 = vadd.f32 %v152_v43, %v148_v45  ;;  %v163_v50 = vadd.f32 %v162_v47, %v158_v46  ;;  %v167_v51 = vld [vmem:[%s166_s18] sm:$0x1]  ;;  %s171_s19 = scalar_lea.vmem [#allocation4], %s443_s8  ;;  %v222_v58 = vsel %vm221_vm3, %v220_v52, %v204_v48  ;;  %s235_s25 = sshll.u32 %s385_s24, 4  ;;  %s236_s25 = int_to_ptr.vmem [resolvable:$true] %s235_s25 }
  0x2e   :  { %v172_v53 = vld [vmem:[%s171_s19] sm:$0x1]  ;;  %s177_s0 = scalar_lea.vmem [#allocation4], %s446_s10  ;;  %s237_s27 = sshll.u32 %s463_s2, 4  ;;  %s238_s27 = int_to_ptr.hbm [resolvable:$true] %s237_s27 }
  0x2f   :  { %v168_v54 = vadd.f32 %v167_v51, %v163_v50  ;;  %v178_v55 = vld [vmem:[%s177_s0] sm:$0x1]  ;;  %v207_v56 = vrot.slane %v153_v49, 3  ;;  %s181_s20 = scalar_lea.vmem [#allocation4], %s307_s12 }
  0x30   :  { %v182_v57 = vld [vmem:[%s181_s20] sm:$0x1]  ;;  %s186_s21 = scalar_lea.vmem [#allocation4], %s450_s14 }
  0x31   :  { %v173_v59 = vadd.f32 %v172_v53, %v168_v54  ;;  %v183_v60 = vadd.f32 %v182_v57, %v178_v55  ;;  %v187_v61 = vld [vmem:[%s186_s21] sm:$0x1]  ;;  %s191_s23 = scalar_lea.vmem [#allocation4], %s309_s16  ;;  %v224_v1 = vsel %vm223_vm4, %v222_v58, %v207_v56 }
  0x32   :  { %v192_v62 = vld [vmem:[%s191_s23] sm:$0x1] }
  0x33   :  { %v188_v63 = vadd.f32 %v187_v61, %v183_v60  ;;  %v210_v0 = vrot.slane %v173_v59, 2 }
  0x35   :  { %v193_v2 = vadd.f32 %v192_v62, %v188_v63  ;;  %v226_v3 = vsel %vm225_vm5, %v224_v1, %v210_v0 }
  0x37   :  { %v213_v4 = vrot.slane %v193_v2, 1 }
  0x39   :  { %v228_v5 = vsel %vm227_vm6, %v226_v3, %v213_v4 }
  0x3a   :  { %229 = vst [vmem:[#allocation7] sm:$0xff] %v228_v5 }
  0x3b   :  { %240 = dma.vmem_to_hbm [thread:$0]  %s236_s25, 128, %s238_s27, [#allocation6]  }
  0x3c   :  { %379 = dma.done.wait [#allocation6], 128  }
  0x3d   :  { %380 = vsyncadd [#allocation6], 4294967168 }
  0x3e   :  { %245 = vsyncpa [#allocation5], 1 }
  0x3f   :  { %246 = vsyncpa [#allocation6], 1 }

</bundles_post_ra>
